<compile_context>
chip_gen: v7x
topology: tpu7x:2x2x1
jax: 0.10.0
libtpu: 0.0.40
codegen_flags: <defaults>
</compile_context>

<pallas_src>
import jax
import jax.numpy as jnp
from jax.experimental import pallas as pl
from jax.experimental.pallas import tpu as pltpu

EPS = 1e-5
LANE = 128


def _round_up(x, m):
    return ((x + m - 1) // m) * m


def _pad2d(a, rows, cols):
    pr, pc = rows - a.shape[0], cols - a.shape[1]
    if pr or pc:
        a = jnp.pad(a, ((0, pr), (0, pc)))
    return a


def _vmem_capacity_bytes():
    """Physical VMEM of the local TPU generation (64 MiB on v7x, 128 MiB on
    v5e/v6e); conservative 64 MiB fallback if the query is unavailable."""
    try:
        return int(pltpu.get_tpu_info().vmem_capacity_bytes)
    except Exception:
        return 64 << 20


def _is_multi_tensorcore_chip():
    """True on chips where 'parallel' grid axes are sharded across >1
    TensorCore (v7x; also v4/v5p megacore).  v5e/v6e have a single TC."""
    try:
        kind = jax.devices()[0].device_kind.lower()
    except Exception:
        return False
    return ("v7" in kind) or ("v4" in kind) or ("v5p" in kind)


# ---------------------------------------------------------------------------
# Primary kernels: the whole contraction (F) dimension sits in one VMEM block,
# so there is no K grid axis, no accumulator scratch, and x is fetched once.
# ---------------------------------------------------------------------------

def _bn_after_fullk_kernel(x_ref, w_ref, gamma_ref, beta_ref, o_ref):
    # (B, Fp) @ (Fp, o_tile) on the MXU, f32 accumulation.
    y = jnp.dot(x_ref[...], w_ref[...], preferred_element_type=jnp.float32)
    # Training-mode BatchNorm1d over the batch axis (biased variance), f32 VPU.
    # The Linear bias is intentionally omitted: subtracting the per-column
    # *batch* mean cancels any per-column constant exactly.  NOTE: this does
    # NOT hold for eval-mode running statistics.
    inv_n = 1.0 / y.shape[0]
    mean = jnp.sum(y, axis=0, keepdims=True) * inv_n
    d = y - mean                                   # two-pass, cancellation-safe
    var = jnp.sum(d * d, axis=0, keepdims=True) * inv_n
    inv = jax.lax.rsqrt(var + EPS)
    o_ref[...] = (d * (inv * gamma_ref[...]) + beta_ref[...]).astype(o_ref.dtype)


def _bn_before_fullk_kernel(x_ref, w_ref, bias_ref, gamma_ref, beta_ref,
                            o_ref, xn_ref):
    # Batch statistics + normalization computed once (j == 0) into a VMEM
    # scratch and reused by every output tile (XLU reductions / EUP rsqrt are
    # not repeated per j).  Requires the j axis to run sequentially
    # ('arbitrary'), see the wrapper.
    @pl.when(pl.program_id(0) == 0)
    def _():
        x = x_ref[...].astype(jnp.float32)
        inv_n = 1.0 / x.shape[0]
        mean = jnp.sum(x, axis=0, keepdims=True) * inv_n
        d = x - mean
        var = jnp.sum(d * d, axis=0, keepdims=True) * inv_n
        inv = jax.lax.rsqrt(var + EPS)
        xn_ref[...] = (d * (inv * gamma_ref[...])
                       + beta_ref[...]).astype(xn_ref.dtype)

    o_ref[...] = (jnp.dot(xn_ref[...], w_ref[...],
                          preferred_element_type=jnp.float32)
                  + bias_ref[...]).astype(o_ref.dtype)


# ---------------------------------------------------------------------------
# Fallback kernels (K-tiled): only used when B * F is too large for the
# whole-F block to sit in VMEM.  Never taken for realistic head shapes.
# ---------------------------------------------------------------------------

def _bn_after_ktiled_kernel(x_ref, w_ref, gamma_ref, beta_ref, o_ref, acc_ref):
    k = pl.program_id(1)

    @pl.when(k == 0)
    def _():
        acc_ref[...] = jnp.zeros_like(acc_ref)

    acc_ref[...] += jnp.dot(x_ref[...], w_ref[...],
                            preferred_element_type=jnp.float32)

    @pl.when(k == pl.num_programs(1) - 1)
    def _():
        y = acc_ref[...]
        inv_n = 1.0 / y.shape[0]
        mean = jnp.sum(y, axis=0, keepdims=True) * inv_n
        d = y - mean
        var = jnp.sum(d * d, axis=0, keepdims=True) * inv_n
        inv = jax.lax.rsqrt(var + EPS)
        o_ref[...] = (d * (inv * gamma_ref[...])
                      + beta_ref[...]).astype(o_ref.dtype)


def _bn_before_ktiled_kernel(x_ref, w_ref, bias_ref, gamma_ref, beta_ref,
                             o_ref, acc_ref):
    k = pl.program_id(1)

    @pl.when(k == 0)
    def _():
        acc_ref[...] = jnp.zeros_like(acc_ref)

    # BN stats are per feature column, so per-K-tile statistics are exact.
    # (Recomputed per (j, k) on this fallback path only.)
    x = x_ref[...].astype(jnp.float32)
    inv_n = 1.0 / x.shape[0]
    mean = jnp.sum(x, axis=0, keepdims=True) * inv_n
    d = x - mean
    var = jnp.sum(d * d, axis=0, keepdims=True) * inv_n
    inv = jax.lax.rsqrt(var + EPS)
    xn = d * (inv * gamma_ref[...]) + beta_ref[...]

    acc_ref[...] += jnp.dot(xn.astype(w_ref.dtype), w_ref[...],
                            preferred_element_type=jnp.float32)

    @pl.when(k == pl.num_programs(1) - 1)
    def _():
        o_ref[...] = (acc_ref[...] + bias_ref[...]).astype(o_ref.dtype)


# ---------------------------------------------------------------------------
# Parameter packing (one-time, at setup) and forward wrapper.
# ---------------------------------------------------------------------------

def pack_bn_head_params(w, b, gamma, beta, bn_where="after",
                        compute_dtype=jnp.bfloat16):
    """One-time parameter packing (do at setup, NOT per forward call):
    transpose W to (F, O), zero-pad to lane-dense tiles, cast the matmul
    operand straight to the MXU compute dtype."""
    assert bn_where in ("before", "after")
    O, F = w.shape
    Fp = _round_up(F, LANE)
    Op0 = _round_up(O, LANE)

    cap = _vmem_capacity_bytes()
    budget = cap // 2                      # tiling budget, leaves DMA headroom
    multi_tc = _is_multi_tensorcore_chip()
    w_item = jnp.dtype(compute_dtype).itemsize

    # Output tile: as large as possible (each grid step costs ~0.35 us), but
    #   * the double-buffered (Fp, o_tile) W tile must fit half the budget,
    #   * on a 2-TensorCore chip keep >= 2 'parallel' j blocks (megacore).
    o_cap = min(1024, Op0)
    if multi_tc and Op0 >= 2 * LANE:
        o_cap = min(o_cap, _round_up((Op0 + 1) // 2, LANE))
    o_tile = LANE
    for cand in (1024, 512, 256, 128):
        cand = min(cand, o_cap)
        if 2 * Fp * cand * w_item <= budget // 2:
            o_tile = cand
            break
    Op = _round_up(Op0, o_tile)

    wt = _pad2d(jnp.transpose(w), Fp, Op).astype(compute_dtype)

    if bn_where == "after":
        gamma_p = _pad2d(gamma.reshape(1, O).astype(jnp.float32), 1, Op)
        beta_p = _pad2d(beta.reshape(1, O).astype(jnp.float32), 1, Op)
        bias_p = None   # cancelled exactly by the batch-mean subtraction
    else:
        gamma_p = _pad2d(gamma.reshape(1, F).astype(jnp.float32), 1, Fp)
        beta_p = _pad2d(beta.reshape(1, F).astype(jnp.float32), 1, Fp)
        bias_p = _pad2d(b.reshape(1, O).astype(jnp.float32), 1, Op)

    return dict(bn_where=bn_where, wt=wt, gamma=gamma_p, beta=beta_p,
                bias=bias_p, F=F, O=O, Fp=Fp, Op=Op, o_tile=o_tile,
                compute_dtype=compute_dtype, vmem_budget=budget, vmem_cap=cap)


def bn_head_forward(x, packed):
    """BNHead forward with pre-packed parameters (see pack_bn_head_params).
    x: (B, ...) input, flattened to (B, F) like x.view(B, -1)."""
    bn_where = packed["bn_where"]
    F, O = packed["F"], packed["O"]
    Fp, Op, o_tile = packed["Fp"], packed["Op"], packed["o_tile"]
    compute_dtype = packed["compute_dtype"]
    budget, cap = packed["vmem_budget"], packed["vmem_cap"]
    wt = packed["wt"]

    B = x.shape[0]
    x2d = x.reshape(B, -1)
    assert x2d.shape[1] == F, "flattened feature dim mismatch"
    out_dtype = x.dtype

    if bn_where == "after":
        xk = _pad2d(x2d, B, Fp).astype(compute_dtype)
    else:
        xk = _pad2d(x2d, B, Fp)   # keep original precision for batch stats

    x_item = jnp.dtype(xk.dtype).itemsize
    w_item = jnp.dtype(compute_dtype).itemsize
    out_item = jnp.dtype(out_dtype).itemsize
    nj = Op // o_tile
    need_xn = bn_where == "before"

    # Primary footprint: resident x + double-buffered W / out tiles
    # (+ normalized-x scratch on the 'before' path) + small (1, tile) vectors.
    est = (2 * B * Fp * x_item
           + 2 * Fp * o_tile * w_item
           + 2 * B * o_tile * out_item
           + (B * Fp * w_item if need_xn else 0)
           + 8 * (Fp + 4 * o_tile) * 4)
    use_fullk = est <= budget
    vmem_limit = int(min(3 * cap // 4, max(3 * est // 2, 24 << 20)))

    cost = pl.CostEstimate(
        flops=2 * B * Fp * Op + 8 * B * max(Fp, Op),
        transcendentals=0,
        bytes_accessed=xk.size * x_item + wt.size * w_item + B * Op * out_item,
    )

    if use_fullk:
        if bn_where == "after":
            inputs = (xk, wt, packed["gamma"], packed["beta"])
            in_specs = [
                pl.BlockSpec((B, Fp), lambda j: (0, 0)),        # x (resident)
                pl.BlockSpec((Fp, o_tile), lambda j: (0, j)),   # W^T stream
                pl.BlockSpec((1, o_tile), lambda j: (0, j)),    # gamma
                pl.BlockSpec((1, o_tile), lambda j: (0, j)),    # beta
            ]
            kernel = _bn_after_fullk_kernel
            scratch = []
            # BN-after stats are per output column -> j blocks independent,
            # so both TensorCores of a v7x chip can split them.
            semantics = ("parallel",)
        else:
            inputs = (xk, wt, packed["bias"], packed["gamma"], packed["beta"])
            in_specs = [
                pl.BlockSpec((B, Fp), lambda j: (0, 0)),        # x (resident)
                pl.BlockSpec((Fp, o_tile), lambda j: (0, j)),   # W^T stream
                pl.BlockSpec((1, o_tile), lambda j: (0, j)),    # bias
                pl.BlockSpec((1, Fp), lambda j: (0, 0)),        # gamma
                pl.BlockSpec((1, Fp), lambda j: (0, 0)),        # beta
            ]
            kernel = _bn_before_fullk_kernel
            scratch = [pltpu.VMEM((B, Fp), compute_dtype)]
            # normalized-x scratch written at j == 0 is reused by every j, so
            # this axis must run sequentially on one core.
            semantics = ("arbitrary",)

        out = pl.pallas_call(
            kernel,
            out_shape=jax.ShapeDtypeStruct((B, Op), out_dtype),
            grid=(nj,),
            in_specs=in_specs,
            out_specs=pl.BlockSpec((B, o_tile), lambda j: (0, j)),
            scratch_shapes=scratch,
            compiler_params=pltpu.CompilerParams(
                dimension_semantics=semantics,
                vmem_limit_bytes=vmem_limit,
            ),
            cost_estimate=cost,
        )(*inputs)
        return out[:, :O]

    # ---- fallback: K-tiled (only for footprints that exceed VMEM) ----------
    f_tile = next(t for t in (512, 256, 128) if Fp % t == 0)
    nk = Fp // f_tile
    est_fb = (2 * B * f_tile * x_item + 2 * f_tile * o_tile * w_item
              + 2 * B * o_tile * out_item + B * o_tile * 4
              + 8 * (f_tile + 4 * o_tile) * 4)
    vmem_limit = int(min(3 * cap // 4, max(3 * est_fb // 2, 24 << 20)))

    if bn_where == "after":
        inputs = (xk, wt, packed["gamma"], packed["beta"])
        in_specs = [
            pl.BlockSpec((B, f_tile), lambda j, k: (0, k)),       # x stream
            pl.BlockSpec((f_tile, o_tile), lambda j, k: (k, j)),  # W^T stream
            pl.BlockSpec((1, o_tile), lambda j, k: (0, j)),       # gamma
            pl.BlockSpec((1, o_tile), lambda j, k: (0, j)),       # beta
        ]
        kernel = _bn_after_ktiled_kernel
    else:
        inputs = (xk, wt, packed["bias"], packed["gamma"], packed["beta"])
        in_specs = [
            pl.BlockSpec((B, f_tile), lambda j, k: (0, k)),       # x stream
            pl.BlockSpec((f_tile, o_tile), lambda j, k: (k, j)),  # W^T stream
            pl.BlockSpec((1, o_tile), lambda j, k: (0, j)),       # bias
            pl.BlockSpec((1, f_tile), lambda j, k: (0, k)),       # gamma
            pl.BlockSpec((1, f_tile), lambda j, k: (0, k)),       # beta
        ]
        kernel = _bn_before_ktiled_kernel

    out = pl.pallas_call(
        kernel,
        out_shape=jax.ShapeDtypeStruct((B, Op), out_dtype),
        grid=(nj, nk),
        in_specs=in_specs,
        out_specs=pl.BlockSpec((B, o_tile), lambda j, k: (0, j)),
        scratch_shapes=[pltpu.VMEM((B, o_tile), jnp.float32)],
        compiler_params=pltpu.CompilerParams(
            dimension_semantics=("parallel", "arbitrary"),
            vmem_limit_bytes=vmem_limit,
        ),
        cost_estimate=cost,
    )(*inputs)
    return out[:, :O]


def _reference(x, w, b, gamma, beta, bn_where="after",
               compute_dtype=jnp.bfloat16):
    """Pure-JAX reference mirroring the kernel numerics (bf16 matmul operands,
    f32 accumulation, f32 training-mode BatchNorm math)."""
    B = x.shape[0]
    x2 = x.reshape(B, -1).astype(jnp.float32)
    wt = jnp.transpose(w).astype(compute_dtype)
    if bn_where == "after":
        y = jnp.dot(x2.astype(compute_dtype), wt,
                    preferred_element_type=jnp.float32) + b
        m = jnp.mean(y, axis=0, keepdims=True)
        v = jnp.mean((y - m) ** 2, axis=0, keepdims=True)
        return (y - m) / jnp.sqrt(v + EPS) * gamma + beta
    m = jnp.mean(x2, axis=0, keepdims=True)
    v = jnp.mean((x2 - m) ** 2, axis=0, keepdims=True)
    xn = (x2 - m) / jnp.sqrt(v + EPS) * gamma + beta
    return jnp.dot(xn.astype(compute_dtype), wt,
                   preferred_element_type=jnp.float32) + b


if __name__ == "__main__":
    # Module config: in_features=32, out_features=64, pooling_size=1, batch=8.
    B, IN_F, OUT_F, POOL = 8, 32, 64, 1
    F = IN_F * POOL * POOL
    key = jax.random.PRNGKey(0)
    kx, kw, kb, kg1, kb1, kg2, kb2 = jax.random.split(key, 7)

    # Head input (B, in_features, pool, pool) -> flattened inside the head.
    x = jax.random.normal(kx, (B, IN_F, POOL, POOL), dtype=jnp.float32)

    # Linear params (weights_init_classifier: weight ~ N(0, 0.001)); a nonzero
    # bias is used to exercise the bias-cancellation path of the kernel.
    w = 0.001 * jax.random.normal(kw, (OUT_F, F), dtype=jnp.float32)  # (O, F)
    b = 0.1 * jax.random.normal(kb, (OUT_F,), dtype=jnp.float32)

    # bn_where='after' (BatchNorm1d over out_features)
    gamma_a = 1.0 + 0.1 * jax.random.normal(kg1, (OUT_F,), dtype=jnp.float32)
    beta_a = 0.1 * jax.random.normal(kb1, (OUT_F,), dtype=jnp.float32)
    packed_a = pack_bn_head_params(w, b, gamma_a, beta_a, bn_where="after")
    out_a = jax.block_until_ready(bn_head_forward(x, packed_a))
    ref_a = _reference(x, w, b, gamma_a, beta_a, bn_where="after")
    assert out_a.shape == (B, OUT_F)
    assert jnp.allclose(out_a, ref_a, atol=5e-3, rtol=5e-3), "mismatch (after)"

    # bn_where='before' (BatchNorm1d over in_features)
    gamma_b = 1.0 + 0.1 * jax.random.normal(kg2, (F,), dtype=jnp.float32)
    beta_b = 0.1 * jax.random.normal(kb2, (F,), dtype=jnp.float32)
    packed_b = pack_bn_head_params(w, b, gamma_b, beta_b, bn_where="before")
    out_b = jax.block_until_ready(bn_head_forward(x, packed_b))
    ref_b = _reference(x, w, b, gamma_b, beta_b, bn_where="before")
    assert out_b.shape == (B, OUT_F)
    assert jnp.allclose(out_b, ref_b, atol=5e-3, rtol=5e-3), "mismatch (before)"

    print("KERNEL_OK")
</pallas_src>

<mosaic_0001>
module attributes {stable_mosaic.version = 11 : i64} {
  func.func @_bn_after_fullk_kernel(%arg0: i32, %arg1: memref<8x128xbf16, #tpu.memory_space<vmem>>, %arg2: memref<128x128xbf16, #tpu.memory_space<vmem>>, %arg3: memref<1x128xf32, #tpu.memory_space<vmem>>, %arg4: memref<1x128xf32, #tpu.memory_space<vmem>>, %arg5: memref<8x128xf32, #tpu.memory_space<vmem>>) attributes {dimension_semantics = [#tpu.dimension_semantics<parallel>], iteration_bounds = array<i64: 1>, scalar_prefetch = 0 : i64, scratch_operands = 0 : i64, tpu.core_type = #tpu.core_type<tc>, window_params = [{pipeline_mode = #tpu.pipeline_mode<synchronous>, transform_indices = @transform_0, window_bounds = array<i64: 8, 128>}, {transform_indices = @transform_1, window_bounds = array<i64: 128, 128>}, {transform_indices = @transform_2, window_bounds = array<i64: 1, 128>}, {transform_indices = @transform_3, window_bounds = array<i64: 1, 128>}, {transform_indices = @transform_4, window_bounds = array<i64: 8, 128>}]} {
    %c0 = arith.constant 0 : index
    %c0_0 = arith.constant 0 : index
    %0 = vector.load %arg1[%c0, %c0_0] : memref<8x128xbf16, #tpu.memory_space<vmem>>, vector<8x128xbf16>
    %c0_1 = arith.constant 0 : index
    %c0_2 = arith.constant 0 : index
    %1 = vector.load %arg2[%c0_1, %c0_2] : memref<128x128xbf16, #tpu.memory_space<vmem>>, vector<128x128xbf16>
    %cst = arith.constant dense<0.000000e+00> : vector<8x128xf32>
    %2 = tpu.matmul %0, %1, %cst {dimension_numbers = #tpu.dot_dimension_numbers<[1], [0], [0], [1], [0, 0, 1, 1], [], []>} : vector<8x128xbf16>, vector<128x128xbf16>, vector<8x128xf32> -> vector<8x128xf32>
    %cst_3 = arith.constant dense<0.000000e+00> : vector<128xf32>
    %3 = vector.multi_reduction <add>, %2, %cst_3 [0] : vector<8x128xf32> to vector<128xf32>
    %4 = vector.shape_cast %3 : vector<128xf32> to vector<1x128xf32>
    %cst_4 = arith.constant 1.250000e-01 : f32
    %5 = vector.broadcast %cst_4 : f32 to vector<1x128xf32>
    %6 = arith.mulf %4, %5 : vector<1x128xf32>
    %7 = vector.broadcast %6 : vector<1x128xf32> to vector<8x128xf32>
    %8 = arith.subf %2, %7 : vector<8x128xf32>
    %9 = arith.mulf %8, %8 : vector<8x128xf32>
    %cst_5 = arith.constant dense<0.000000e+00> : vector<128xf32>
    %10 = vector.multi_reduction <add>, %9, %cst_5 [0] : vector<8x128xf32> to vector<128xf32>
    %11 = vector.shape_cast %10 : vector<128xf32> to vector<1x128xf32>
    %cst_6 = arith.constant 1.250000e-01 : f32
    %12 = vector.broadcast %cst_6 : f32 to vector<1x128xf32>
    %13 = arith.mulf %11, %12 : vector<1x128xf32>
    %cst_7 = arith.constant 9.99999974E-6 : f32
    %14 = vector.broadcast %cst_7 : f32 to vector<1x128xf32>
    %15 = arith.addf %13, %14 : vector<1x128xf32>
    %16 = math.rsqrt %15 : vector<1x128xf32>
    %c0_8 = arith.constant 0 : index
    %c0_9 = arith.constant 0 : index
    %17 = vector.load %arg3[%c0_8, %c0_9] : memref<1x128xf32, #tpu.memory_space<vmem>>, vector<1x128xf32>
    %18 = arith.mulf %16, %17 : vector<1x128xf32>
    %19 = vector.broadcast %18 : vector<1x128xf32> to vector<8x128xf32>
    %20 = arith.mulf %8, %19 : vector<8x128xf32>
    %c0_10 = arith.constant 0 : index
    %c0_11 = arith.constant 0 : index
    %21 = vector.load %arg4[%c0_10, %c0_11] : memref<1x128xf32, #tpu.memory_space<vmem>>, vector<1x128xf32>
    %22 = vector.broadcast %21 : vector<1x128xf32> to vector<8x128xf32>
    %23 = arith.addf %20, %22 : vector<8x128xf32>
    %c0_12 = arith.constant 0 : index
    %c0_13 = arith.constant 0 : index
    %24 = vector.load %arg5[%c0_12, %c0_13] : memref<8x128xf32, #tpu.memory_space<vmem>>, vector<8x128xf32>
    tpu.vector_store %arg5[%c0_12, %c0_13], %23 {strides = array<i32>} : memref<8x128xf32, #tpu.memory_space<vmem>>, vector<8x128xf32>,
    return
  }
  func.func @transform_0(%arg0: i32) -> (i32, i32) {
    %c0_i32 = arith.constant 0 : i32
    %c0_i32_0 = arith.constant 0 : i32
    %c0_i32_1 = arith.constant 0 : i32
    return %c0_i32, %c0_i32_0 : i32, i32
  }
  func.func @transform_1(%arg0: i32) -> (i32, i32) {
    %c0_i32 = arith.constant 0 : i32
    %c0_i32_0 = arith.constant 0 : i32
    return %c0_i32, %arg0 : i32, i32
  }
  func.func @transform_2(%arg0: i32) -> (i32, i32) {
    %c0_i32 = arith.constant 0 : i32
    %c0_i32_0 = arith.constant 0 : i32
    return %c0_i32, %arg0 : i32, i32
  }
  func.func @transform_3(%arg0: i32) -> (i32, i32) {
    %c0_i32 = arith.constant 0 : i32
    %c0_i32_0 = arith.constant 0 : i32
    return %c0_i32, %arg0 : i32, i32
  }
  func.func @transform_4(%arg0: i32) -> (i32, i32) {
    %c0_i32 = arith.constant 0 : i32
    %c0_i32_0 = arith.constant 0 : i32
    return %c0_i32, %arg0 : i32, i32
  }
}

</mosaic_0001>

<bundles_post_ra>
// kernel: tpu_custom_call.1
= control target key start
LH: loop header
LB: loop body
LE: loop exit
PB: predicated region body
PF: predicated region fallthrough
CT: control target
= control target key end

     0   :  { %9 = vsyncpa [#allocation3], 0  ;;  %s408_s0 = inlined_call_operand.hbm [shape: bf16[8,128], index: 0, kind: input, shape index: {}]   ;;  %s409_s1 = inlined_call_operand.hbm [shape: bf16[128,128], index: 1, kind: input, shape index: {}]   ;;  %s410_s2 = inlined_call_operand.vmem [shape: f32[1,128], index: 2, kind: input, shape index: {}]   ;;  %s411_s3 = inlined_call_operand.vmem [shape: f32[1,128], index: 3, kind: input, shape index: {}]   ;;  %s412_s4 = inlined_call_operand.hbm [shape: f32[8,128], index: 4, kind: output, shape index: {}]  }
   0x1   :  { %10 = vsyncpa [#allocation6], 0 }
   0x2   :  { %11 = vsyncpa [#allocation4], 0  ;;  %s327_s15 = smov [#allocation2]   ;;  %s328_s17 = smov [#allocation5]  }
   0x3   :  { %s18_s16 = sshll.u32 %s327_s15, 4  ;;  %s27_s18 = sshll.u32 %s328_s17, 4  ;;  %s19_s16 = int_to_ptr.vmem [resolvable:$true] %s18_s16  ;;  %s359_s18 = int_to_ptr.vmem [resolvable:$true] %s27_s18 }
   0x4   :  { %s255_s21 = scalar_lea.hbm %s408_s0, 64 }
   0x5   :  { %p256_p0 = scmp.ne.s32.totalorder %s408_s0, %s255_s21  ;;  %p259_p1 = scmp.lt.u32.totalorder %s255_s21, %s408_s0 }
   0x7   :  { %p261_p2 = pnand %p259_p1, %p256_p0 }
   0x9   :  { %264 = shalt.err (!%p261_p2)
}
   0xa   :  { %s265_s26 = scalar_lea.vmem %s19_s16, 64  ;;  %p270_p4 = scmp.lt.s32.totalorder %s19_s16, %s19_s16 }
   0xb   :  { %p266_p3 = scmp.ne.s32.totalorder %s19_s16, %s265_s26  ;;  %p271_p5 = scmp.lt.s32.totalorder %s265_s26, %s265_s26 }
   0xd   :  { %p272_p6 = por %p271_p5, %p270_p4 }
   0xf   :  { %p273_p7 = pnand %p272_p6, %p266_p3 }
  0x11   :  { %276 = shalt.err (!%p273_p7)
}
  0x12   :  { %21 = dma.hbm_to_vmem [thread:$0]  %s408_s0, 64, %s19_s16, [#allocation3]  }
  0x13   :  { %s277_s5 = scalar_lea.hbm %s409_s1, 1024 }
  0x14   :  { %p278_p8 = scmp.ne.s32.totalorder %s409_s1, %s277_s5  ;;  %p281_p9 = scmp.lt.u32.totalorder %s277_s5, %s409_s1 }
  0x16   :  { %p283_p10 = pnand %p281_p9, %p278_p8 }
  0x18   :  { %286 = shalt.err (!%p283_p10)
}
  0x19   :  { %s287_s10 = scalar_lea.vmem %s359_s18, 1024  ;;  %p292_p12 = scmp.lt.s32.totalorder %s359_s18, %s359_s18 }
  0x1a   :  { %p288_p11 = scmp.ne.s32.totalorder %s359_s18, %s287_s10  ;;  %p293_p13 = scmp.lt.s32.totalorder %s287_s10, %s287_s10 }
  0x1c   :  { %p294_p0 = por %p293_p13, %p292_p12 }
  0x1e   :  { %p295_p1 = pnand %p294_p0, %p288_p11 }
  0x20   :  { %298 = shalt.err (!%p295_p1)
}
  0x21   :  { %s329_s0 = smov 64   ;;  %s330_s11 = smov 4  }
  0x22   :  { %33 = dma.hbm_to_vmem [thread:$0]  %s409_s1, 1024, %s359_s18, [#allocation6], %s329_s0, %s329_s0, %s330_s11  }
  0x23   :  { %321 = dma.done.wait [#allocation3], 64  }
  0x24   :  { %322 = vsyncadd [#allocation3], 4294967232 }
  0x25   :  { %323 = dma.done.wait [#allocation6], 1024  }
  0x26   :  { %324 = vsyncadd [#allocation6], 4294966272  ;;  %v331_v0 = vmov 0.0   ;;  %vm332_vm0 = vmmov 0   ;;  %v245_v1 = vld [vmem:[#allocation5] sm:$0xff]   ;;  %v246_v2 = vld [vmem:[#allocation5 + $0x8] sm:$0xff]   ;;  %v170_v31 = vlaneseq }
  0x27   :  { %218 = vmatprep.subr.bf16.mxu0 %v331_v0  ;;  %234 = vmatprep.mubr.msk.bf16.mxu0 %vm332_vm0, %v331_v0  ;;  %v247_v3 = vld [vmem:[#allocation5 + $0x10] sm:$0xff]   ;;  %v248_v4 = vld [vmem:[#allocation5 + $0x18] sm:$0xff]   ;;  %v249_v5 = vld [vmem:[#allocation5 + $0x20] sm:$0xff]   ;;  %s333_s17 = smov [#allocation7]  }
  0x28   :  { %219 = vmatpush3.bf16.msra.mxu0 %v245_v1  ;;  %v250_v6 = vld [vmem:[#allocation5 + $0x28] sm:$0xff]   ;;  %v251_v7 = vld [vmem:[#allocation5 + $0x30] sm:$0xff]   ;;  %v252_v8 = vld [vmem:[#allocation5 + $0x38] sm:$0xff]   ;;  %v171_v32 = vshrl.u32 %v170_v31, 7  ;;  %s190_s18 = sshll.u32 %s333_s17, 4  ;;  %s191_s18 = int_to_ptr.vmem [resolvable:$true] %s190_s18 }
  0x29   :  { %220 = vmatprep.subr.bf16.mxu0 %v331_v0  ;;  %v45_v9 = vld [vmem:[#allocation2] sm:$0xf]  ;;  %s299_s19 = scalar_lea.vmem %s191_s18, 128  ;;  %p304_p3 = scmp.lt.s32.totalorder %s191_s18, %s191_s18 }
  0x2a   :  { %v168_v33 = vld [vmem:[%s410_s2] sm:$0x1]  ;;  %v172_v34 = vsub.s32 0, %v171_v32  ;;  %p300_p2 = scmp.ne.s32.totalorder %s191_s18, %s299_s19  ;;  %p305_p4 = scmp.lt.s32.totalorder %s299_s19, %s299_s19 }
  0x2b   :  { %v208_v38 = vld [vmem:[%s411_s3] ss:$0 sm:$0xff] }
  0x2c   :  { %221 = vmatpush3.bf16.msra.mxu0 %v246_v2  ;;  %p306_p5 = por %p305_p4, %p304_p3 }
  0x2d   :  { %222 = vmatprep.subr.bf16.mxu0 %v331_v0 }
  0x2e   :  { %p307_p6 = pnand %p306_p5, %p300_p2 }
  0x30   :  { %223 = vmatpush3.bf16.msra.mxu0 %v247_v3 }
  0x31   :  { %224 = vmatprep.subr.bf16.mxu0 %v331_v0 }
  0x34   :  { %225 = vmatpush3.bf16.msra.mxu0 %v248_v4 }
  0x35   :  { %226 = vmatprep.subr.bf16.mxu0 %v331_v0 }
  0x38   :  { %227 = vmatpush3.bf16.msra.mxu0 %v249_v5 }
  0x39   :  { %228 = vmatprep.subr.bf16.mxu0 %v331_v0 }
  0x3c   :  { %229 = vmatpush3.bf16.msra.mxu0 %v250_v6 }
  0x3d   :  { %230 = vmatprep.subr.bf16.mxu0 %v331_v0 }
  0x40   :  { %231 = vmatpush3.bf16.msra.mxu0 %v251_v7 }
  0x41   :  { %232 = vmatprep.subr.bf16.mxu0 %v331_v0 }
  0x44   :  { %233 = vmatpush3.bf16.msra.mxu0 %v252_v8 }
  0x47   :  { %235 = vmatmul.mubr.bf16.vlgmr.msra.gmra.mrb[0].mxu0 %v45_v9 }
 0x11a   :  { %v144_v10 = vpop.f32.mrb[0].mxu0 }
 0x11b   :  { %v150_v11 = vrot.slane %v144_v10, 4  ;;  %v236_v12 = vpop.f32.mrb[1].mxu0 }
 0x11c   :  { %v147_v13 = vpop.f32.mrb[2].mxu0 }
 0x11d   :  { %v151_v14 = vadd.f32 %v150_v11, %v144_v10  ;;  %v237_v15 = vpop.f32.mrb[3].mxu0 }
 0x11f   :  { %v152_v16 = vrot.slane %v151_v14, 2 }
 0x121   :  { %v153_v17 = vadd.f32 %v152_v16, %v151_v14 }
 0x123   :  { %v154_v18 = vrot.slane %v153_v17, 1 }
 0x125   :  { %v155_v19 = vadd.f32 %v154_v18, %v153_v17 }
 0x127   :  { %v156_v20 = vmul.f32 0.125, %v155_v19 }
 0x129   :  { %v157_v21 = vsub.f32 %v144_v10, %v156_v20 }
 0x12b   :  { %v158_v22 = vmul.f32 %v157_v21, %v157_v21 }
 0x12d   :  { %v159_v23 = vrot.slane %v158_v22, 4 }
 0x12f   :  { %v160_v24 = vadd.f32 %v159_v23, %v158_v22 }
 0x131   :  { %v161_v25 = vrot.slane %v160_v24, 2 }
 0x133   :  { %v162_v26 = vadd.f32 %v161_v25, %v160_v24 }
 0x135   :  { %v163_v27 = vrot.slane %v162_v26, 1 }
 0x137   :  { %v164_v28 = vadd.f32 %v163_v27, %v162_v26 }
 0x139   :  { %v165_v29 = vmul.f32 0.125, %v164_v28 }
 0x13b   :  { %v166_v30 = vadd.f32 1e-05, %v165_v29 }
 0x13d   :  { %253 = vrsqrt.f32 %v166_v30 }
 0x147   :  { %v254_v35 = vpop.eup %253 }
 0x148   :  { %v169_v36 = vmul.f32 %v254_v35, %v168_v33 }
 0x14a   :  { %v173_v37 = vrot.slane %v169_v36, %v172_v34 }
 0x14c   :  { %v174_v39 = vmul.f32 %v173_v37, %v157_v21 }
 0x14e   :  { %v182_v40 = vadd.f32 %v208_v38, %v174_v39 }
 0x150   :  { %183 = vst [vmem:[#allocation7] sm:$0xff] %v182_v40 }
 0x151   :  { %310 = shalt.err (!%p307_p6)
}
 0x152   :  { %s311_s21 = scalar_lea.hbm %s412_s4, 128 }
 0x153   :  { %p312_p7 = scmp.ne.s32.totalorder %s412_s4, %s311_s21  ;;  %p315_p8 = scmp.lt.u32.totalorder %s311_s21, %s412_s4 }
 0x155   :  { %p317_p9 = pnand %p315_p8, %p312_p7 }
 0x157   :  { %320 = shalt.err (!%p317_p9)
}
 0x158   :  { %193 = dma.vmem_to_hbm [thread:$0]  %s191_s18, 128, %s412_s4, [#allocation4]  }
 0x159   :  { %325 = dma.done.wait [#allocation4], 128  }
 0x15a   :  { %326 = vsyncadd [#allocation4], 4294967168 }
 0x15b   :  { %197 = vsyncpa [#allocation3], 1 }
 0x15c   :  { %198 = vsyncpa [#allocation6], 1 }
 0x15d   :  { %199 = vsyncpa [#allocation4], 1 }

</bundles_post_ra>
